<compile_context>
chip_gen: v5e
topology: v5e:2x2
jax: 0.10.0
libtpu: 0.0.40
codegen_flags: <defaults>
</compile_context>

<pallas_src>
import numpy as np

import jax
import jax.numpy as jnp
from jax import lax
from jax.experimental import pallas as pl
from jax.experimental.pallas import tpu as pltpu


# ----------------------------------------------------------------------------
# Kernels
# ----------------------------------------------------------------------------
def _angle_linear_kernel(x_ref, w_ref, xinv_ref, winv_ref, o_ref):
    """Un-tiled-D path: one MXU pass per (batch tile, class tile)."""
    raw = lax.dot_general(
        x_ref[...], w_ref[...],
        dimension_numbers=(((1,), (1,)), ((), ())),   # contract feature dim
        preferred_element_type=jnp.float32,
    )                                                 # (tm, tn) f32
    # cosine = raw matmul scaled by outer product of precomputed inverse norms
    o_ref[...] = (raw * xinv_ref[...] * winv_ref[...]).astype(o_ref.dtype)


def _angle_linear_kernel_ktiled(x_ref, w_ref, xinv_ref, winv_ref, o_ref, acc_ref):
    """K-tiled fallback: grid axis 2 walks the feature dim, f32 accumulator."""
    k = pl.program_id(2)

    @pl.when(k == 0)
    def _():
        acc_ref[...] = jnp.zeros_like(acc_ref)

    acc_ref[...] += lax.dot_general(
        x_ref[...], w_ref[...],
        dimension_numbers=(((1,), (1,)), ((), ())),
        preferred_element_type=jnp.float32,
    )

    @pl.when(k == pl.num_programs(2) - 1)
    def _():
        o_ref[...] = (acc_ref[...] * xinv_ref[...] * winv_ref[...]).astype(o_ref.dtype)


# ----------------------------------------------------------------------------
# Tile planning helpers
# ----------------------------------------------------------------------------
def _round_up(x, m):
    return ((x + m - 1) // m) * m


def _vmem_capacity_bytes():
    """Physical VMEM per TensorCore (128 MiB v5e/v6e, 64 MiB v7x)."""
    try:
        return int(pltpu.get_tpu_info().vmem_capacity_bytes)
    except Exception:
        return 64 * 1024 * 1024   # conservative: valid on every generation


def _choose_tiles(B, D, O, xbytes, wbytes, obytes, budget):
    """Pick (tm, tn, tk) fitting `budget` bytes of VMEM (tk == D => no K-tiling)."""
    # 256-alignment feeds the 2x256x256 MXU of v6e/v7x fully (also fine on v5e).
    lane_align = 256 if O > 128 else 128
    sub_align = 256 if B >= 256 else 8
    tm = min(256, _round_up(B, sub_align))
    tn = min(1024, _round_up(O, lane_align))

    def usage(tm_, tn_, tk_, ktiled):
        u = (2 * tm_ * tk_ * xbytes      # x tile      (double-buffered)
             + 2 * tn_ * tk_ * wbytes    # w tile      (double-buffered)
             + 2 * tm_ * tn_ * obytes    # out tile    (double-buffered)
             + 2 * (tm_ + tn_) * 4)      # inverse-norm vectors
        if ktiled:
            u += tm_ * tn_ * 4           # f32 accumulator scratch
        return u

    # 1) Prefer un-tiled D: single pass over the contraction dim, w read once.
    if usage(tm, tn, D, False) <= budget:
        return tm, tn, D

    # 2) K-tile D, keeping tn as large as possible (minimizes x re-streaming).
    def max_tk(tm_, tn_):
        per_k = 2 * tm_ * xbytes + 2 * tn_ * wbytes
        fixed = 2 * tm_ * tn_ * obytes + tm_ * tn_ * 4 + 2 * (tm_ + tn_) * 4
        if budget <= fixed:
            return 0
        return ((budget - fixed) // per_k) // 256 * 256

    while max_tk(tm, tn) < 256 and tn > lane_align:
        tn = max(lane_align, tn // 2)
    while max_tk(tm, tn) < 256 and tm > 8:
        tm = max(8, tm // 2)

    tk = min(max(256, max_tk(tm, tn)), _round_up(D, 256))
    if tk >= D:
        return tm, tn, D
    return tm, tn, tk


# ----------------------------------------------------------------------------
# Wrapper
# ----------------------------------------------------------------------------
def angle_linear(x, weight, *, tm=None, tn=None, tk=None):
    """x: (B, in_features), weight: (out_features, in_features) -> (B, out_features)."""
    B, D = x.shape
    O, D2 = weight.shape
    assert D == D2, "feature dim mismatch"

    out_dtype = x.dtype
    xbytes = jnp.dtype(x.dtype).itemsize
    wbytes = jnp.dtype(weight.dtype).itemsize
    obytes = jnp.dtype(out_dtype).itemsize

    # Generation-aware VMEM budget + explicit scoped-VMEM limit.
    vmem_cap = _vmem_capacity_bytes()
    vmem_limit = min(vmem_cap * 3 // 4, 100 * 1024 * 1024)   # ~96 MiB v5e/v6e, ~48 MiB v7x
    budget = int(vmem_limit * 0.85)

    a_tm, a_tn, a_tk = _choose_tiles(B, D, O, xbytes, wbytes, obytes, budget)
    tm = a_tm if tm is None else tm
    tn = a_tn if tn is None else tn
    tk = a_tk if tk is None else tk
    assert tm % 8 == 0 and tn % 128 == 0, "tm must be 8-aligned, tn 128-aligned"
    ktiled = tk < D
    if ktiled:
        assert tk % 128 == 0, "tk must be 128-aligned"

    # Wrapper-side zero padding (instead of divisibility asserts): keeps output
    # stores lane-dense and VMEM bounded for any B / O / D.  Padded rows/cols
    # produce zeros and are sliced off below.
    Bp = _round_up(B, tm)
    Op = _round_up(O, tn)
    Dp = _round_up(D, tk) if ktiled else D
    x_p = x if (Bp == B and Dp == D) else jnp.pad(x, ((0, Bp - B), (0, Dp - D)))
    w_p = weight if (Op == O and Dp == D) else jnp.pad(weight, ((0, Op - O), (0, Dp - D)))

    # Per-row inverse L2 norms, computed ONCE in the wrapper (O(B)+O(O) work)
    # in the layouts the kernel broadcasts from.  rsqrt(max(sumsq, 1e-24)) ==
    # 1 / max(||.||, 1e-12), matching F.normalize's eps (zero rows included).
    x32 = x_p.astype(jnp.float32)
    x_inv = lax.rsqrt(jnp.maximum(jnp.sum(x32 * x32, axis=1, keepdims=True), 1e-24))  # (Bp, 1)
    w32 = w_p.astype(jnp.float32)
    w_inv = lax.rsqrt(jnp.maximum(jnp.sum(w32 * w32, axis=1), 1e-24))[None, :]        # (1, Op)

    nj, ni = Op // tn, Bp // tm
    w_reads = (Bp // tm) if ktiled else 1   # w is read once when D is un-tiled
    cost = pl.CostEstimate(
        flops=2 * Bp * Op * Dp,
        transcendentals=0,
        bytes_accessed=(w_reads * Op * Dp * wbytes
                        + nj * Bp * Dp * xbytes
                        + Bp * Op * obytes
                        + (Bp + Op) * 4),
    )

    if not ktiled:
        out_p = pl.pallas_call(
            _angle_linear_kernel,
            out_shape=jax.ShapeDtypeStruct((Bp, Op), out_dtype),
            grid_spec=pltpu.PrefetchScalarGridSpec(
                num_scalar_prefetch=0,
                # classes outer, batch inner -> weight tile resident over i.
                grid=(nj, ni),
                in_specs=[
                    pl.BlockSpec((tm, Dp), lambda j, i: (i, 0)),   # x      (streams)
                    pl.BlockSpec((tn, Dp), lambda j, i: (j, 0)),   # w      (resident over i)
                    pl.BlockSpec((tm, 1), lambda j, i: (i, 0)),    # 1/|x|  (streams, tiny)
                    pl.BlockSpec((1, tn), lambda j, i: (0, j)),    # 1/|w|  (resident over i)
                ],
                out_specs=pl.BlockSpec((tm, tn), lambda j, i: (i, j)),
            ),
            compiler_params=pltpu.CompilerParams(
                # Only the class axis is parallel: a dual-TC split shards
                # classes, keeping per-TC weight HBM reads disjoint.
                dimension_semantics=("parallel", "arbitrary"),
                vmem_limit_bytes=int(vmem_limit),
            ),
            cost_estimate=cost,
        )(x_p, w_p, x_inv, w_inv)
    else:
        nk = Dp // tk
        out_p = pl.pallas_call(
            _angle_linear_kernel_ktiled,
            out_shape=jax.ShapeDtypeStruct((Bp, Op), out_dtype),
            grid_spec=pltpu.PrefetchScalarGridSpec(
                num_scalar_prefetch=0,
                grid=(nj, ni, nk),                                 # reduction axis last
                in_specs=[
                    pl.BlockSpec((tm, tk), lambda j, i, k: (i, k)),
                    pl.BlockSpec((tn, tk), lambda j, i, k: (j, k)),
                    pl.BlockSpec((tm, 1), lambda j, i, k: (i, 0)),
                    pl.BlockSpec((1, tn), lambda j, i, k: (0, j)),
                ],
                out_specs=pl.BlockSpec((tm, tn), lambda j, i, k: (i, j)),
                scratch_shapes=[pltpu.VMEM((tm, tn), jnp.float32)],
            ),
            compiler_params=pltpu.CompilerParams(
                dimension_semantics=("parallel", "arbitrary", "arbitrary"),
                vmem_limit_bytes=int(vmem_limit),
            ),
            cost_estimate=cost,
        )(x_p, w_p, x_inv, w_inv)

    return out_p[:B, :O] if (Bp != B or Op != O) else out_p


# ----------------------------------------------------------------------------
# Init + reference (host-side, float64, unambiguous)
# ----------------------------------------------------------------------------
def init_angle_linear_weight(key, in_features, out_features):
    """Mimic: weight.uniform_(-1, 1).renorm_(2, 0, 1e-5).mul_(1e5)."""
    w = jax.random.uniform(key, (out_features, in_features),
                           minval=-1.0, maxval=1.0, dtype=jnp.float32)
    maxnorm = 1e-5
    row_norm = jnp.sqrt(jnp.sum(w * w, axis=1, keepdims=True))
    scale = jnp.where(row_norm > maxnorm, maxnorm / (row_norm + 1e-7), 1.0)
    return w * scale * 1e5


def angle_linear_ref(x, weight):
    x64 = np.asarray(x, dtype=np.float64)
    w64 = np.asarray(weight, dtype=np.float64)
    xn = x64 / np.maximum(np.linalg.norm(x64, axis=1, keepdims=True), 1e-12)
    wn = w64 / np.maximum(np.linalg.norm(w64, axis=1, keepdims=True), 1e-12)
    return xn @ wn.T


if __name__ == "__main__":
    key = jax.random.PRNGKey(0)
    k_x, k_w, k_x2, k_w2 = jax.random.split(key, 4)

    # --- Path 1: un-tiled D, non-multiple class count (padding), 2x2 grid. ---
    batch, in_features, out_features = 16, 128, 200
    x = jax.random.normal(k_x, (batch, in_features), dtype=jnp.float32)
    x = x.at[0].set(0.0)                       # exercise the zero-row eps path
    w = init_angle_linear_weight(k_w, in_features, out_features)

    out = jax.block_until_ready(angle_linear(x, w, tm=8, tn=128))
    ref = angle_linear_ref(x, w)
    assert out.shape == (batch, out_features)
    # Tolerance covers the case where the MXU performs the f32 matmul via
    # bf16 passes; outputs are cosines in [-1, 1] so a genuine indexing /
    # normalization bug would be O(1), far above this threshold.
    assert np.allclose(np.asarray(out), ref, atol=2e-2), "mismatch (un-tiled D)"

    # --- Path 2: K-tiled fallback (forced via tk < D), 2x2x2 grid. ---
    b2, d2, o2 = 16, 512, 256
    x2 = jax.random.normal(k_x2, (b2, d2), dtype=jnp.float32)
    w2 = init_angle_linear_weight(k_w2, d2, o2)

    out2 = jax.block_until_ready(angle_linear(x2, w2, tm=8, tn=128, tk=256))
    ref2 = angle_linear_ref(x2, w2)
    assert out2.shape == (b2, o2)
    assert np.allclose(np.asarray(out2), ref2, atol=2e-2), "mismatch (K-tiled D)"

    print("KERNEL_OK")
</pallas_src>

<mosaic_0001>
module attributes {stable_mosaic.version = 11 : i64} {
  func.func @_angle_linear_kernel(%arg0: i32, %arg1: i32, %arg2: memref<8x128xf32, #tpu.memory_space<vmem>>, %arg3: memref<128x128xf32, #tpu.memory_space<vmem>>, %arg4: memref<8x1xf32, #tpu.memory_space<vmem>>, %arg5: memref<1x128xf32, #tpu.memory_space<vmem>>, %arg6: memref<8x128xf32, #tpu.memory_space<vmem>>) attributes {dimension_semantics = [#tpu.dimension_semantics<parallel>, #tpu.dimension_semantics<arbitrary>], iteration_bounds = array<i64: 2, 2>, scalar_prefetch = 0 : i64, scratch_operands = 0 : i64, tpu.core_type = #tpu.core_type<tc>, window_params = [{transform_indices = @transform_0, window_bounds = array<i64: 8, 128>}, {transform_indices = @transform_1, window_bounds = array<i64: 128, 128>}, {transform_indices = @transform_2, window_bounds = array<i64: 8, 1>}, {transform_indices = @transform_3, window_bounds = array<i64: 1, 128>}, {transform_indices = @transform_4, window_bounds = array<i64: 8, 128>}]} {
    %c0 = arith.constant 0 : index
    %c0_0 = arith.constant 0 : index
    %0 = vector.load %arg2[%c0, %c0_0] : memref<8x128xf32, #tpu.memory_space<vmem>>, vector<8x128xf32>
    %c0_1 = arith.constant 0 : index
    %c0_2 = arith.constant 0 : index
    %1 = vector.load %arg3[%c0_1, %c0_2] : memref<128x128xf32, #tpu.memory_space<vmem>>, vector<128x128xf32>
    %cst = arith.constant dense<0.000000e+00> : vector<8x128xf32>
    %2 = tpu.matmul %0, %1, %cst {dimension_numbers = #tpu.dot_dimension_numbers<[1], [1], [0], [0], [0, 0, 1, 0], [], []>} : vector<8x128xf32>, vector<128x128xf32>, vector<8x128xf32> -> vector<8x128xf32>
    %c0_3 = arith.constant 0 : index
    %c0_4 = arith.constant 0 : index
    %3 = vector.load %arg4[%c0_3, %c0_4] : memref<8x1xf32, #tpu.memory_space<vmem>>, vector<8x1xf32>
    %4 = vector.broadcast %3 : vector<8x1xf32> to vector<8x128xf32>
    %5 = arith.mulf %2, %4 : vector<8x128xf32>
    %c0_5 = arith.constant 0 : index
    %c0_6 = arith.constant 0 : index
    %6 = vector.load %arg5[%c0_5, %c0_6] : memref<1x128xf32, #tpu.memory_space<vmem>>, vector<1x128xf32>
    %7 = vector.broadcast %6 : vector<1x128xf32> to vector<8x128xf32>
    %8 = arith.mulf %5, %7 : vector<8x128xf32>
    %c0_7 = arith.constant 0 : index
    %c0_8 = arith.constant 0 : index
    %9 = vector.load %arg6[%c0_7, %c0_8] : memref<8x128xf32, #tpu.memory_space<vmem>>, vector<8x128xf32>
    tpu.vector_store %arg6[%c0_7, %c0_8], %8 {strides = array<i32>} : memref<8x128xf32, #tpu.memory_space<vmem>>, vector<8x128xf32>,
    return
  }
  func.func @transform_0(%arg0: i32, %arg1: i32) -> (i32, i32) {
    %c0_i32 = arith.constant 0 : i32
    %c0_i32_0 = arith.constant 0 : i32
    return %arg1, %c0_i32 : i32, i32
  }
  func.func @transform_1(%arg0: i32, %arg1: i32) -> (i32, i32) {
    %c0_i32 = arith.constant 0 : i32
    %c0_i32_0 = arith.constant 0 : i32
    return %arg0, %c0_i32 : i32, i32
  }
  func.func @transform_2(%arg0: i32, %arg1: i32) -> (i32, i32) {
    %c0_i32 = arith.constant 0 : i32
    %c0_i32_0 = arith.constant 0 : i32
    return %arg1, %c0_i32 : i32, i32
  }
  func.func @transform_3(%arg0: i32, %arg1: i32) -> (i32, i32) {
    %c0_i32 = arith.constant 0 : i32
    %c0_i32_0 = arith.constant 0 : i32
    return %c0_i32, %arg0 : i32, i32
  }
  func.func @transform_4(%arg0: i32, %arg1: i32) -> (i32, i32) {
    %c0_i32 = arith.constant 0 : i32
    return %arg1, %arg0 : i32, i32
  }
}

</mosaic_0001>

<bundles_post_ra>
// kernel: tpu_custom_call.1
= control target key start
LH: loop header
LB: loop body
LE: loop exit
PB: predicated region body
PF: predicated region fallthrough
CT: control target
= control target key end

     0   :  { %s977_s0 = inlined_call_operand.vmem [shape: f32[16,128], index: 0, kind: input, shape index: {}]   ;;  %s978_s1 = inlined_call_operand.hbm [shape: f32[256,128], index: 1, kind: input, shape index: {}]   ;;  %s979_s2 = inlined_call_operand.vmem [shape: f32[16,1], index: 2, kind: input, shape index: {}]   ;;  %s980_s3 = inlined_call_operand.vmem [shape: f32[1,256], index: 3, kind: input, shape index: {}]   ;;  %s981_s4 = inlined_call_operand.hbm [shape: f32[16,256], index: 4, kind: output, shape index: {}]  }
   0x1   :  { %986 = sst [smem:[#allocation13_spill]] %s978_s1 }
   0x2   :  { %9 = vsyncpa [#allocation3], 0 }
   0x3   :  { %11 = vsyncpa [#allocation3 + $0x1], 0 }
   0x4   :  { %12 = vsyncpa [#allocation4], 0 }
   0x5   :  { %14 = vsyncpa [#allocation4 + $0x1], 0  ;;  %s772_s15 = smov 0   ;;  %s774_s16 = smov 0  }
   0x6   :  { %s776_s17 = smov 0   ;;  %s778_s18 = smov 0  }
   0x7   :  { %s780_s19 = smov 0   ;;  %s782_s20 = smov 0  }
   0x8   :  { %s784_s21 = smov 0   ;;  %s786_s22 = smov 0  }
   0x9   :  { %s788_s23 = smov 0   ;;  %s790_s24 = smov 0  }
   0xa   :  { %s792_s25 = smov 0  }
   0xb LB: > { %987 = sst [smem:[#allocation8_spill]] %s734_s23  ;;  %s465_s26 = sadd.s32 4294967295, %s742_s25   ;;  %s742_s25 = sphi %s792_s25, %s20_s25   ;;  %s738_s24 = sphi %s790_s24, %s1002_s24   ;;  %s734_s23 = sphi %s788_s23, %s1001_s23   ;;  %s730_s22 = sphi %s786_s22, %s1000_s22   ;;  %s726_s21 = sphi %s784_s21, %s999_s21   ;;  %s722_s20 = sphi %s782_s20, %s1008_s20   ;;  %s718_s19 = sphi %s780_s19, %s1007_s19   ;;  %s714_s18 = sphi %s778_s18, %s1006_s18   ;;  %s710_s17 = sphi %s776_s17, %s1005_s17   ;;  %s706_s16 = sphi %s774_s16, %s1004_s16   ;;  %s702_s15 = sphi %s772_s15, %s1003_s15  }
   0xc   : > { %988 = sst [smem:[#allocation9_spill]] %s738_s24  ;;  %s466_s27 = sadd.s32 4294967294, %s742_s25  }
   0xd   : > { %s29_s28 = sadd.s32 1, %s734_s23  ;;  %s32_s29 = sadd.s32 1, %s738_s24 }
   0xe   : > { %p30_p0 = scmp.ge.s32.totalorder %s29_s28, 2  ;;  %s65_s30 = sadd.s32 1, %s722_s20 }
   0xf   : > { %p72_p1 = scmp.ne.s32.totalorder %s722_s20, %s718_s19  ;;  %p73_p2 = scmp.eq.s32.totalorder %s742_s25, 0 }
  0x10   : > { %s1010_s28 = smov (%p30_p0, %s29_s28), 0  ;;  %s1012_s29 = smov (!%p30_p0, %s32_s29), %s738_s24 }
  0x11   : > { %989 = sst [smem:[#allocation10_spill]] %s1010_s28  ;;  %p836_p3 = por %p73_p2, %p72_p1 }
  0x12   : > { %p78_p4 = scmp.ne.s32.totalorder %s718_s19, %s714_s18  ;;  %p34_p5 = scmp.ge.s32.totalorder %s1012_s29, 2 }
  0x13   : > { %p79_p6 = scmp.eq.s32.totalorder %s465_s26, 0  ;;  %s140_s6 = ssub.s32 %s734_s23, %s1010_s28 }
  0x14   : > { %s145_s7 = sadd.s32 1, %s710_s17  ;;  %s1014_s29 = smov (%p34_p5, %s1012_s29), 0 }
  0x15   : > { %991 = sst [smem:[#allocation11_spill]] %s1014_s29  ;;  %p846_p7 = por %p79_p6, %p78_p4 }
  0x16   : > { %p155_p8 = scmp.ne.s32.totalorder %s710_s17, %s706_s16  ;;  %s62_s9 = ssub.s32 %s738_s24, %s1014_s29 }
  0x17   : > { %p156_p9 = scmp.eq.s32.totalorder %s465_s26, 3  ;;  %p63_p10 = scmp.eq.s32.totalorder %s62_s9, 0 }
  0x18   : > { %s142_s10 = sor.u32 %s140_s6, %s62_s9  ;;  %p161_p13 = scmp.ne.s32.totalorder %s706_s16, %s702_s15 }
  0x19   : > { %p143_p11 = scmp.eq.s32.totalorder %s142_s10, 0  ;;  %p854_p12 = por %p156_p9, %p155_p8 }
  0x1a   : > { %s859_s12 = scalar_select %p63_p10, %s722_s20, %s65_s30  }
  0x1b   : > { %s862_s13 = scalar_select %p143_p11, %s710_s17, %s145_s7  }
  0x1c   : > { %994 = sst [smem:[#allocation12_spill]] %s859_s12  ;;  %p162_p0 = scmp.eq.s32.totalorder %s466_s27, 3 }
  0x1d   : > { %p495_p1 = scmp.lt.s32.totalorder %s742_s25, 4  ;;  %s189_s18 = sand.u32 1, %s722_s20  }
  0x1e   : > { %p867_p2 = por %p162_p0, %p161_p13  ;;  %s469_s26 = sshll.u32 %s189_s18, 7 }
  0x1f   : > { %s482_s6 = sshll.u32 %s738_s24, 7  ;;  %s996_s1 = sld [smem:[#allocation13_spill]] }
  0x20   : > { %s193_s30 = scalar_lea.vmem [#allocation2], %s469_s26  ;;  %p488_p4 = pnand %p495_p1, %p836_p3 }
  0x21   : > { %s201_s28 = sshll.u32 %s193_s30, 4  ;;  %p472_p5 = scmp.ge.s32.totalorder %s742_s25, 1  ;;  %s202_s28 = int_to_ptr.vmem [resolvable:$true] %s201_s28 }
  0x22   : > { %s190_s27 = scalar_lea.sflag [#allocation3], %s189_s18  ;;  %s744_s7 = smov 128  }
  0x23   : > { %s745_s12 = smov 8   ;;  %p222_p6 = scmp.lt.s32.totalorder %s742_s25, 5 }
  0x25   : > { %s198_s29 = scalar_lea.hbm %s996_s1, %s482_s6  ;;  %p223_p8 = pnand %p472_p5, %p222_p6 }
  0x26   : > { %s199_s23 = sshll.u32 %s198_s29, 4  ;;  %s228_s24 = sand.u32 (!%p223_p8), 1, %s718_s19   ;;  %s200_s23 = int_to_ptr.hbm [resolvable:$true] %s199_s23 }
  0x27   : > { %490 = dma.hbm_to_vmem [thread:$0]  (!%p488_p4), %s200_s23, 2048, %s202_s28, %s190_s27, %s744_s7, %s744_s7, %s745_s12  }
  0x28   : > { %226 = sbr.rel (%p223_p8) target bundleno = 243 (0xf3), region = 36  ;;  %s473_s9 = sshll.u32 (!%p223_p8), %s228_s24, 7 }
  0x29   : > { %s229_s6 = scalar_lea.sflag (!%p223_p8), [#allocation3], %s228_s24  ;;  %s881_s26 = scalar_lea.vmem (!%p223_p8), [#allocation2], %s473_s9 }
  0x2d   : > { %693 = dma.done.wait (%p846_p7), %s229_s6, 2048  }
  0x2e   : > { %695 = vsyncadd (%p846_p7), %s229_s6, 4294965248  ;;  %v297_v0 = vld [vmem:[%s881_s26 + $0x78] sm:$0xff]  ;;  %v296_v1 = vld [vmem:[%s881_s26 + $0x70] sm:$0xff]  ;;  %p269_p3 = scmp.lt.s32.totalorder %s726_s21, 1  ;;  %p278_p7 = scmp.lt.s32.totalorder %s730_s22, 1  ;;  %v746_v10 = vmov 0  }
  0x2f   : > { %298 = vmatpush.xpose.msra.mxu0 %v297_v0  ;;  %v295_v2 = vld [vmem:[%s881_s26 + $0x68] sm:$0xff]  ;;  %v294_v3 = vld [vmem:[%s881_s26 + $0x60] sm:$0xff]  ;;  %v293_v4 = vld [vmem:[%s881_s26 + $0x58] sm:$0xff]  ;;  %588 = vset.pattern.permute.xlu0 %v746_v10  ;;  %s478_s9 = sshll.u32 %s726_s21, 1  ;;  %s266_s6 = sand.u32 1, %s706_s16  }
  0x30   : > { %v292_v5 = vld [vmem:[%s881_s26 + $0x50] sm:$0xff]  ;;  %v291_v6 = vld [vmem:[%s881_s26 + $0x48] sm:$0xff]  ;;  %s897_s23 = scalar_select %p278_p7, %s730_s22, 1  ;;  %v290_v7 = vld [vmem:[%s881_s26 + $0x40] sm:$0xff] }
  0x31   : > { %s270_s24 = scalar_select %p269_p3, %s726_s21, 1  ;;  %v289_v8 = vld [vmem:[%s881_s26 + $0x38] sm:$0xff]  ;;  %v288_v11 = vld [vmem:[%s881_s26 + $0x30] sm:$0xff]  ;;  %v287_v12 = vld [vmem:[%s881_s26 + $0x28] sm:$0xff] }
  0x32   : > { %v286_v13 = vld [vmem:[%s881_s26 + $0x20] sm:$0xff]  ;;  %v285_v14 = vld [vmem:[%s881_s26 + $0x18] sm:$0xff]  ;;  %v284_v15 = vld [vmem:[%s881_s26 + $0x10] sm:$0xff]  ;;  %s474_s28 = sshll.u32 %s266_s6, 3  ;;  %s332_s21 = scalar_lea.sflag [#allocation4], %s266_s6 }
  0x33   : > { %299 = vmatpush.xpose.msra.mxu0 %v296_v1  ;;  %s475_s8 = sshll.u32 %s270_s24, 3  ;;  %v283_v16 = vld [vmem:[%s881_s26 + $0x8] sm:$0xff]  ;;  %v282_v17 = vld [vmem:[%s881_s26] sm:$0xff]  ;;  %s342_s24 = sadd.s32 %s730_s22, %s478_s9 }
  0x34   : > { %s277_s10 = scalar_lea.vmem %s979_s2, %s475_s8  ;;  %s272_s7 = scalar_lea.vmem %s977_s0, %s475_s8 }
  0x35   : > { %v318_v9 = vld [vmem:[%s277_s10] sm:$0xff]  ;;  %s479_s29 = sshll.u32 %s342_s24, 3  ;;  %s997_s26 = scalar_lea.vmem %s980_s3, %s897_s23 }
  0x36   : > { %321 = vperm.xlu0 %588, %v318_v9   ;;  %v281_v18 = vld [vmem:[%s272_s7] sm:$0xff]  ;;  %s344_s10 = scalar_lea.hbm %s981_s4, %s479_s29  ;;  %s268_s8 = scalar_lea.vmem [#allocation5], %s474_s28 }
  0x37   : > { %300 = vmatpush.xpose.msra.mxu0 %v295_v2  ;;  %v589_v20 = vld [vmem:[%s997_s26] ss:$0 sm:$0xff]  ;;  %s346_s30 = sshll.u32 %s268_s8, 4  ;;  %s348_s27 = sshll.u32 %s344_s10, 4  ;;  %s347_s30 = int_to_ptr.vmem [resolvable:$true] %s346_s30  ;;  %s349_s27 = int_to_ptr.hbm [resolvable:$true] %s348_s27 }
  0x38   : > { %s634_s22 = sshra.s32 %s349_s27, 4  ;;  %s640_s5 = scalar_lea.hbm %s981_s4, 32  ;;  %s635_s22 = int_to_ptr.hbm [resolvable:$true] %s634_s22 }
  0x39   : > { %s636_s7 = scalar_lea.hbm %s635_s22, 8  ;;  %p641_p13 = scmp.lt.s32.totalorder %s635_s22, %s981_s4 }
  0x3a   : > { %p637_p9 = scmp.ne.s32.totalorder %s635_s22, %s636_s7  ;;  %p642_p0 = scmp.lt.s32.totalorder %s640_s5, %s636_s7 }
  0x3b   : > { %301 = vmatpush.xpose.msra.mxu0 %v294_v3 }
  0x3c   : > { %p638_p10 = pnand %p637_p9, %p854_p12  ;;  %p643_p1 = por %p642_p0, %p641_p13 }
  0x3e   : > { %p639_p11 = pneg %p638_p10 }
  0x3f   : > { %302 = vmatpush.xpose.msra.mxu0 %v293_v4 }
  0x40   : > { %p644_p4 = pnand %p643_p1, %p639_p11 }
  0x43   : > { %303 = vmatpush.xpose.msra.mxu0 %v292_v5 }
  0x47   : > { %304 = vmatpush.xpose.msra.mxu0 %v291_v6 }
  0x4b   : > { %305 = vmatpush.xpose.msra.mxu0 %v290_v7 }
  0x4f   : > { %306 = vmatpush.xpose.msra.mxu0 %v289_v8 }
  0x53   : > { %307 = vmatpush.xpose.msra.mxu0 %v288_v11 }
  0x57   : > { %308 = vmatpush.xpose.msra.mxu0 %v287_v12 }
  0x5b   : > { %309 = vmatpush.xpose.msra.mxu0 %v286_v13 }
  0x5f   : > { %310 = vmatpush.xpose.msra.mxu0 %v285_v14 }
  0x63   : > { %311 = vmatpush.xpose.msra.mxu0 %v284_v15 }
  0x67   : > { %312 = vmatpush.xpose.msra.mxu0 %v283_v16 }
  0x6b   : > { %313 = vmatpush.xpose.msra.mxu0 %v282_v17 }
  0x6e   : > { %314 = vmatmul.f32.vlgmr.msra.gmra.mxu0 %v281_v18 }
  0xa8   : > { %v322_v19 = vpop.permute.xlu0 %321 }
  0xeb   : > { %v315_v21 = vpop.f32.mrf.mxu0 }
  0xec   : > { %v324_v22 = vmul.f32 %v322_v19, %v315_v21 }
  0xee   : > { %v329_v23 = vmul.f32 %v589_v20, %v324_v22 }
  0xf0   : > { %330 = vst [vmem:[%s268_s8] sm:$0xff] %v329_v23 }
  0xf1   : > { %647 = shalt.err (!%p644_p4)
}
  0xf2   : > { %485 = dma.vmem_to_hbm [thread:$0]  (%p854_p12), %s347_s30, 128, %s349_s27, %s332_s21  }
  0xf3 PF: > { %p496_p5 = scmp.ge.s32.totalorder %s742_s25, 2  ;;  %s360_s6 = sand.u32 1, %s702_s15  }
  0xf4   : > { %s361_s28 = scalar_lea.sflag [#allocation4], %s360_s6 }
  0xf5   : > { %p492_p6 = pnand %p496_p5, %p867_p2 }
  0xf7   : > { %p493_p8 = pneg %p492_p6 }
  0xf9   : > { %697 = dma.done.wait (%p493_p8), %s361_s28, 128  }
  0xfa   : > { %699 = vsyncadd (%p493_p8), %s361_s28, 4294967168  ;;  %s20_s25 = sadd.s32 1, %s742_s25   ;;  %s998_s11 = sld [smem:[#allocation12_spill]] }
  0xfb   : > { %p17_p3 = scmp.ge.s32.totalorder %s20_s25, 6   ;;  %s999_s21 = sld [smem:[#allocation8_spill]] }
  0xfc   : > { %s1000_s22 = sld [smem:[#allocation9_spill]]  ;;  %s1003_s15 = smov %s706_s16 }
  0xfd   : > { %s1001_s23 = sld [smem:[#allocation10_spill]]  ;;  %s1004_s16 = smov %s710_s17 }
  0xfe   : > { %s1002_s24 = sld [smem:[#allocation11_spill]]  ;;  %s1005_s17 = smov %s862_s13 }
  0xff   : > { %s1006_s18 = smov %s718_s19  ;;  %s1007_s19 = smov %s722_s20 }
 0x100   : > { %s1008_s20 = smov %s998_s11  ;;  %19 = sbr.rel (!%p17_p3) target bundleno = 11 (0xb), region = 90 }
 0x105   :  { %367 = vsyncpa [#allocation3], 1 }
 0x106   :  { %369 = vsyncpa [#allocation3 + $0x1], 1 }
 0x107   :  { %370 = vsyncpa [#allocation4], 1 }
 0x108   :  { %372 = vsyncpa [#allocation4 + $0x1], 1 }

</bundles_post_ra>
